<compile_context>
chip_gen: v5e
topology: v5e:2x2
jax: 0.10.0
libtpu: 0.0.40
codegen_flags: <defaults>
</compile_context>

<pallas_src>
import functools

import jax
import jax.numpy as jnp
from jax.experimental import pallas as pl
from jax.experimental.pallas import tpu as pltpu


def _double_conv_kernel(x_ref, w1_ref, b1_ref, w2_ref, b2_ref, o_ref, *,
                        use_act, H):
    # x_ref  : (M, W*Cin)        bf16   M = nb*H unpadded rows (nb images)
    # w1_ref : (3, W*Cin, W*Cmid) bf16  banded conv1 weights (one per kh tap)
    # b1_ref : (1, W*Cmid)        f32   bias tiled along W
    # w2_ref : (3, W*Cmid, W*Cout) bf16
    # b2_ref : (1, W*Cout)        f32
    # o_ref  : (M, W*Cout)        f32   lane-dense output block
    f32 = jnp.float32
    bf16 = jnp.bfloat16
    M = x_ref.shape[0]

    # Row masks: local row index within each image.  They kill both the
    # rotate wrap-around row and cross-image bleed when nb > 1.
    row = jax.lax.broadcasted_iota(jnp.int32, (M, 1), 0)
    not_first = (row % H) != 0        # tap kh=0 (row above) invalid here
    not_last = (row % H) != (H - 1)   # tap kh=2 (row below) invalid here

    def band_conv3(lhs_bf16, w_ref, b_row):
        # Three back-to-back MXU matmuls on the SAME (already bf16) LHS.
        y0 = jnp.dot(lhs_bf16, w_ref[0], preferred_element_type=f32)
        y1 = jnp.dot(lhs_bf16, w_ref[1], preferred_element_type=f32)
        y2 = jnp.dot(lhs_bf16, w_ref[2], preferred_element_type=f32)
        # Vertical 'SAME' padding via output row shifts (XLU) + masks (VPU):
        #   out[r] = y1[r] + y0[r-1] + y2[r+1], boundary rows zeroed.
        down = pltpu.roll(y0, shift=1, axis=0)        # row r <- y0[r-1]
        up = pltpu.roll(y2, shift=M - 1, axis=0)      # row r <- y2[r+1]
        acc = y1 + jnp.where(not_first, down, 0.0) + jnp.where(not_last, up, 0.0)
        return acc + b_row                            # f32 epilogue

    x = x_ref[...]                                    # bf16, cast done in wrapper
    mid = jnp.tanh(band_conv3(x, w1_ref, b1_ref[...]))        # f32 (M, W*Cmid)
    out = band_conv3(mid.astype(bf16), w2_ref, b2_ref[...])   # single bf16 cast
    if use_act:
        out = jnp.tanh(out)
    o_ref[...] = out.astype(o_ref.dtype)              # lane-dense store


def _banded_conv_weights(w_hwio, W, dtype=jnp.bfloat16):
    """Fold the 3 horizontal taps + horizontal 'SAME' zero padding of a 3x3
    conv into block-banded matmul weights.

    Returns B of shape (3, W*Ci, W*Co) with
        B[kh, wi*Ci + ci, wo*Co + co] = w_hwio[kh, wi - wo + 1, ci, co]
    (zero where the tap falls outside [0, 3)), so that
        out_row[r] = sum_kh  x_row[r + kh - 1] @ B[kh]
    is the 'SAME' 3x3 conv flattened lane-dense as (.., W*Co).
    """
    _, _, Ci, Co = w_hwio.shape
    wi = jnp.arange(W)[:, None]                  # input column
    wo = jnp.arange(W)[None, :]                  # output column
    kw = wi - wo + 1                             # horizontal tap feeding wo
    valid = (kw >= 0) & (kw < 3)
    taps = w_hwio[:, jnp.clip(kw, 0, 2)]         # (3, W, W, Ci, Co)
    taps = jnp.where(valid[None, :, :, None, None], taps, 0.0)
    banded = taps.transpose(0, 1, 3, 2, 4).reshape(3, W * Ci, W * Co)
    return banded.astype(dtype)


def prepare_double_conv_params(w1, b1, w2, b2, W):
    """Precompute banded weights + lane-tiled biases ONCE per weight update
    (hoisted out of the per-call forward path)."""
    Cmid = w1.shape[-1]
    Cout = w2.shape[-1]
    w1b = _banded_conv_weights(w1, W)                      # (3, W*Cin,  W*Cmid)
    w2b = _banded_conv_weights(w2, W)                      # (3, W*Cmid, W*Cout)
    b1t = jnp.tile(b1.astype(jnp.float32), W).reshape(1, W * Cmid)
    b2t = jnp.tile(b2.astype(jnp.float32), W).reshape(1, W * Cout)
    return w1b, b1t, w2b, b2t


def _pick_images_per_step(N, H, rows_target=256):
    """Images per grid step.  Grow M = nb*H toward rows_target (fills the MXU
    M dim, amortizes ~0.35us/step overhead, grows per-step DMA), but keep at
    least 2 grid steps when N >= 2 so both v7x TensorCores get work."""
    nb = max(1, min(N, rows_target // max(H, 1)))
    if N >= 2:
        nb = min(nb, (N + 1) // 2)
    while N % nb:
        nb -= 1
    if (nb * H) % 8 != 0:          # keep second-minor block dim sublane-aligned
        nb = N                      # block == full array is always legal
    return nb


def double_conv_flat(x_flat, params, *, N, H, use_act=True):
    """Fused DoubleConvBlock on the flat layout.

    x_flat: (N*H, W*Cin) channels-last rows (lane index = w*Cin + ci), any
    float dtype (cast to bf16 once here).  Returns (N*H, W*Cout) float32.
    """
    w1b, b1t, w2b, b2t = params
    KI = x_flat.shape[-1]            # W*Cin
    KM = b1t.shape[-1]               # W*Cmid
    KO = b2t.shape[-1]               # W*Cout
    nb = _pick_images_per_step(N, H)
    M = nb * H
    grid_n = N // nb

    # VMEM budget check (v7x: 64 MiB phys / 32 MiB scoped default).  Banded
    # weights + in/out blocks are pipeline-resident (weights single-buffered
    # since their block index is constant, activations double-buffered).
    vmem_est = (w1b.size + w2b.size) * 2 + 2 * (M * KI * 2 + M * KO * 4)
    if vmem_est > 24 * 1024 * 1024:
        # TODO(synk): add W-tiling / raise vmem_limit_bytes for large W*C.
        raise NotImplementedError("banded weights exceed conservative VMEM budget")

    kernel = functools.partial(_double_conv_kernel, use_act=use_act, H=H)
    return pl.pallas_call(
        kernel,
        out_shape=jax.ShapeDtypeStruct((N * H, KO), jnp.float32),
        grid_spec=pltpu.PrefetchScalarGridSpec(
            num_scalar_prefetch=0,
            grid=(grid_n,),
            in_specs=[
                pl.BlockSpec((M, KI), lambda n: (n, 0)),
                pl.BlockSpec((3, KI, KM), lambda n: (0, 0, 0)),
                pl.BlockSpec((1, KM), lambda n: (0, 0)),
                pl.BlockSpec((3, KM, KO), lambda n: (0, 0, 0)),
                pl.BlockSpec((1, KO), lambda n: (0, 0)),
            ],
            out_specs=pl.BlockSpec((M, KO), lambda n: (n, 0)),
        ),
        compiler_params=pltpu.CompilerParams(
            dimension_semantics=("parallel",)),
    )(x_flat.astype(jnp.bfloat16), w1b, b1t, w2b, b2t)


def double_conv_block(x_nchw, params, *, use_act=True):
    """DoubleConvBlock forward on NCHW input (module interface).

    NOTE: the NCHW<->flat transposes below are separate XLA HBM round-trips;
    performance-sensitive callers (esp. v5e) should use double_conv_flat.
    """
    N, Cin, H, W = x_nchw.shape
    x_flat = jnp.transpose(x_nchw, (0, 2, 3, 1)).astype(jnp.bfloat16)
    x_flat = x_flat.reshape(N * H, W * Cin)
    out_flat = double_conv_flat(x_flat, params, N=N, H=H, use_act=use_act)
    Cout = out_flat.shape[-1] // W
    out = out_flat.reshape(N, H, W, Cout)
    return jnp.transpose(out, (0, 3, 1, 2))                # back to NCHW


def _reference(x_nchw, w1, b1, w2, b2, *, use_act=True):
    """Pure-JAX f32 reference using lax conv (NHWC / HWIO)."""
    x = jnp.transpose(x_nchw, (0, 2, 3, 1)).astype(jnp.float32)
    dn = jax.lax.conv_dimension_numbers(x.shape, w1.shape,
                                        ("NHWC", "HWIO", "NHWC"))
    y = jax.lax.conv_general_dilated(x, w1, (1, 1), "SAME",
                                     dimension_numbers=dn) + b1
    y = jnp.tanh(y)
    dn2 = jax.lax.conv_dimension_numbers(y.shape, w2.shape,
                                         ("NHWC", "HWIO", "NHWC"))
    y = jax.lax.conv_general_dilated(y, w2, (1, 1), "SAME",
                                     dimension_numbers=dn2) + b2
    if use_act:
        y = jnp.tanh(y)
    return jnp.transpose(y, (0, 3, 1, 2))


if __name__ == "__main__":
    key = jax.random.PRNGKey(0)
    N, Cin, H, W = 2, 4, 16, 16
    Cmid, Cout = 8, 8  # out_features defaults to mid_features in the module

    k_x, k_w1, k_b1, k_w2, k_b2, k_x2 = jax.random.split(key, 6)
    x = jax.random.normal(k_x, (N, Cin, H, W), jnp.float32)

    # PyTorch-like uniform init: bound = 1/sqrt(fan_in), fan_in = Cin*3*3.
    bound1 = 1.0 / jnp.sqrt(jnp.float32(Cin * 9))
    w1 = jax.random.uniform(k_w1, (3, 3, Cin, Cmid), jnp.float32,
                            -bound1, bound1)
    b1 = jax.random.uniform(k_b1, (Cmid,), jnp.float32, -bound1, bound1)
    bound2 = 1.0 / jnp.sqrt(jnp.float32(Cmid * 9))
    w2 = jax.random.uniform(k_w2, (3, 3, Cmid, Cout), jnp.float32,
                            -bound2, bound2)
    b2 = jax.random.uniform(k_b2, (Cout,), jnp.float32, -bound2, bound2)

    # Banded weights / tiled biases computed once, outside the jitted forward.
    params = prepare_double_conv_params(w1, b1, w2, b2, W)

    fwd = jax.jit(functools.partial(double_conv_block, use_act=True))
    out = jax.block_until_ready(fwd(x, params))

    ref = _reference(x, w1, b1, w2, b2, use_act=True)
    assert out.shape == (N, Cout, H, W)
    # Tolerance reflects bf16 matmul operands (f32 accumulation).
    max_err = float(jnp.max(jnp.abs(out - ref)))
    assert jnp.allclose(out, ref, atol=3e-2, rtol=3e-2), max_err

    # Second check with a larger batch to exercise multi-image blocks
    # (nb > 1: image-boundary masking path inside one grid step).
    N2 = 8
    x2 = jax.random.normal(k_x2, (N2, Cin, H, W), jnp.float32)
    out2 = jax.block_until_ready(fwd(x2, params))
    ref2 = _reference(x2, w1, b1, w2, b2, use_act=True)
    max_err2 = float(jnp.max(jnp.abs(out2 - ref2)))
    assert jnp.allclose(out2, ref2, atol=3e-2, rtol=3e-2), max_err2

    print("KERNEL_OK")
</pallas_src>

<mosaic_0001>
module attributes {stable_mosaic.version = 11 : i64} {
  func.func @_double_conv_kernel(%arg0: i32, %arg1: memref<16x64xbf16, #tpu.memory_space<vmem>>, %arg2: memref<3x64x128xbf16, #tpu.memory_space<vmem>>, %arg3: memref<1x128xf32, #tpu.memory_space<vmem>>, %arg4: memref<3x128x128xbf16, #tpu.memory_space<vmem>>, %arg5: memref<1x128xf32, #tpu.memory_space<vmem>>, %arg6: memref<16x128xf32, #tpu.memory_space<vmem>>) attributes {dimension_semantics = [#tpu.dimension_semantics<parallel>], iteration_bounds = array<i64: 2>, scalar_prefetch = 0 : i64, scratch_operands = 0 : i64, tpu.core_type = #tpu.core_type<tc>, window_params = [{transform_indices = @transform_0, window_bounds = array<i64: 16, 64>}, {pipeline_mode = #tpu.pipeline_mode<synchronous>, transform_indices = @transform_1, window_bounds = array<i64: 3, 64, 128>}, {pipeline_mode = #tpu.pipeline_mode<synchronous>, transform_indices = @transform_2, window_bounds = array<i64: 1, 128>}, {pipeline_mode = #tpu.pipeline_mode<synchronous>, transform_indices = @transform_3, window_bounds = array<i64: 3, 128, 128>}, {pipeline_mode = #tpu.pipeline_mode<synchronous>, transform_indices = @transform_4, window_bounds = array<i64: 1, 128>}, {transform_indices = @transform_5, window_bounds = array<i64: 16, 128>}]} {
    %0 = tpu.iota {dimensions = array<i32: 0>} : vector<16x1xi32>
    %c16_i32 = arith.constant 16 : i32
    %c0_i32 = arith.constant 0 : i32
    %1 = arith.cmpi eq, %c16_i32, %c0_i32 : i32
    %c1_i32 = arith.constant 1 : i32
    %2 = arith.select %1, %c1_i32, %c16_i32 : i32
    %3 = vector.broadcast %2 : i32 to vector<16x1xi32>
    %4 = arith.remsi %0, %3 : vector<16x1xi32>
    %c0_i32_0 = arith.constant 0 : i32
    %5 = vector.broadcast %c0_i32_0 : i32 to vector<16x1xi32>
    %6 = arith.cmpi ne, %4, %5 : vector<16x1xi32>
    %c0_i32_1 = arith.constant 0 : i32
    %7 = vector.broadcast %c0_i32_1 : i32 to vector<16x1xi32>
    %8 = arith.cmpi slt, %4, %7 : vector<16x1xi32>
    %c0_i32_2 = arith.constant 0 : i32
    %9 = arith.cmpi slt, %2, %c0_i32_2 : i32
    %10 = vector.broadcast %9 : i1 to vector<16x1xi1>
    %11 = vector.broadcast %10 : vector<16x1xi1> to vector<16x1xi1>
    %12 = arith.xori %8, %11 : vector<16x1xi1>
    %13 = arith.andi %12, %6 : vector<16x1xi1>
    %14 = vector.broadcast %2 : i32 to vector<16x1xi32>
    %15 = arith.addi %4, %14 : vector<16x1xi32>
    %16 = arith.select %13, %15, %4 : vector<16x1xi1>, vector<16x1xi32>
    %c0_i32_3 = arith.constant 0 : i32
    %17 = vector.broadcast %c0_i32_3 : i32 to vector<16x1xi32>
    %18 = arith.cmpi ne, %16, %17 : vector<16x1xi32>
    %c16_i32_4 = arith.constant 16 : i32
    %c0_i32_5 = arith.constant 0 : i32
    %19 = arith.cmpi eq, %c16_i32_4, %c0_i32_5 : i32
    %c1_i32_6 = arith.constant 1 : i32
    %20 = arith.select %19, %c1_i32_6, %c16_i32_4 : i32
    %21 = vector.broadcast %20 : i32 to vector<16x1xi32>
    %22 = arith.remsi %0, %21 : vector<16x1xi32>
    %c0_i32_7 = arith.constant 0 : i32
    %23 = vector.broadcast %c0_i32_7 : i32 to vector<16x1xi32>
    %24 = arith.cmpi ne, %22, %23 : vector<16x1xi32>
    %c0_i32_8 = arith.constant 0 : i32
    %25 = vector.broadcast %c0_i32_8 : i32 to vector<16x1xi32>
    %26 = arith.cmpi slt, %22, %25 : vector<16x1xi32>
    %c0_i32_9 = arith.constant 0 : i32
    %27 = arith.cmpi slt, %20, %c0_i32_9 : i32
    %28 = vector.broadcast %27 : i1 to vector<16x1xi1>
    %29 = vector.broadcast %28 : vector<16x1xi1> to vector<16x1xi1>
    %30 = arith.xori %26, %29 : vector<16x1xi1>
    %31 = arith.andi %30, %24 : vector<16x1xi1>
    %32 = vector.broadcast %20 : i32 to vector<16x1xi32>
    %33 = arith.addi %22, %32 : vector<16x1xi32>
    %34 = arith.select %31, %33, %22 : vector<16x1xi1>, vector<16x1xi32>
    %c15_i32 = arith.constant 15 : i32
    %35 = vector.broadcast %c15_i32 : i32 to vector<16x1xi32>
    %36 = arith.cmpi ne, %34, %35 : vector<16x1xi32>
    %c0 = arith.constant 0 : index
    %c0_10 = arith.constant 0 : index
    %37 = vector.load %arg1[%c0, %c0_10] : memref<16x64xbf16, #tpu.memory_space<vmem>>, vector<16x64xbf16>
    %c0_11 = arith.constant 0 : index
    %c0_12 = arith.constant 0 : index
    %38 = vector.load %arg3[%c0_11, %c0_12] : memref<1x128xf32, #tpu.memory_space<vmem>>, vector<1x128xf32>
    %c0_13 = arith.constant 0 : index
    %c0_14 = arith.constant 0 : index
    %c0_15 = arith.constant 0 : index
    %39 = vector.load %arg2[%c0_13, %c0_14, %c0_15] : memref<3x64x128xbf16, #tpu.memory_space<vmem>>, vector<1x64x128xbf16>
    %40 = vector.shape_cast %39 : vector<1x64x128xbf16> to vector<64x128xbf16>
    %cst = arith.constant dense<0.000000e+00> : vector<16x128xf32>
    %41 = tpu.matmul %37, %40, %cst {dimension_numbers = #tpu.dot_dimension_numbers<[1], [0], [0], [1], [0, 0, 1, 1], [], []>} : vector<16x64xbf16>, vector<64x128xbf16>, vector<16x128xf32> -> vector<16x128xf32>
    %c1 = arith.constant 1 : index
    %c0_16 = arith.constant 0 : index
    %c0_17 = arith.constant 0 : index
    %42 = vector.load %arg2[%c1, %c0_16, %c0_17] : memref<3x64x128xbf16, #tpu.memory_space<vmem>>, vector<1x64x128xbf16>
    %43 = vector.shape_cast %42 : vector<1x64x128xbf16> to vector<64x128xbf16>
    %cst_18 = arith.constant dense<0.000000e+00> : vector<16x128xf32>
    %44 = tpu.matmul %37, %43, %cst_18 {dimension_numbers = #tpu.dot_dimension_numbers<[1], [0], [0], [1], [0, 0, 1, 1], [], []>} : vector<16x64xbf16>, vector<64x128xbf16>, vector<16x128xf32> -> vector<16x128xf32>
    %c2 = arith.constant 2 : index
    %c0_19 = arith.constant 0 : index
    %c0_20 = arith.constant 0 : index
    %45 = vector.load %arg2[%c2, %c0_19, %c0_20] : memref<3x64x128xbf16, #tpu.memory_space<vmem>>, vector<1x64x128xbf16>
    %46 = vector.shape_cast %45 : vector<1x64x128xbf16> to vector<64x128xbf16>
    %cst_21 = arith.constant dense<0.000000e+00> : vector<16x128xf32>
    %47 = tpu.matmul %37, %46, %cst_21 {dimension_numbers = #tpu.dot_dimension_numbers<[1], [0], [0], [1], [0, 0, 1, 1], [], []>} : vector<16x64xbf16>, vector<64x128xbf16>, vector<16x128xf32> -> vector<16x128xf32>
    %c1_i32_22 = arith.constant 1 : i32
    %48 = tpu.dynamic_rotate %41 by %c1_i32_22 dim 0 : vector<16x128xf32>, i32 -> vector<16x128xf32>
    %c15_i32_23 = arith.constant 15 : i32
    %49 = tpu.dynamic_rotate %47 by %c15_i32_23 dim 0 : vector<16x128xf32>, i32 -> vector<16x128xf32>
    %cst_24 = arith.constant 0.000000e+00 : f32
    %50 = vector.shape_cast %18 : vector<16x1xi1> to vector<16x1xi1>
    %51 = vector.broadcast %50 : vector<16x1xi1> to vector<16x128xi1>
    %52 = vector.broadcast %cst_24 : f32 to vector<16x128xf32>
    %53 = arith.select %51, %48, %52 : vector<16x128xi1>, vector<16x128xf32>
    %54 = arith.addf %44, %53 : vector<16x128xf32>
    %cst_25 = arith.constant 0.000000e+00 : f32
    %55 = vector.shape_cast %36 : vector<16x1xi1> to vector<16x1xi1>
    %56 = vector.broadcast %55 : vector<16x1xi1> to vector<16x128xi1>
    %57 = vector.broadcast %cst_25 : f32 to vector<16x128xf32>
    %58 = arith.select %56, %49, %57 : vector<16x128xi1>, vector<16x128xf32>
    %59 = arith.addf %54, %58 : vector<16x128xf32>
    %60 = vector.broadcast %38 : vector<1x128xf32> to vector<16x128xf32>
    %61 = arith.addf %59, %60 : vector<16x128xf32>
    %62 = math.tanh %61 : vector<16x128xf32>
    %63 = arith.truncf %62 : vector<16x128xf32> to vector<16x128xbf16>
    %c0_26 = arith.constant 0 : index
    %c0_27 = arith.constant 0 : index
    %64 = vector.load %arg5[%c0_26, %c0_27] : memref<1x128xf32, #tpu.memory_space<vmem>>, vector<1x128xf32>
    %c0_28 = arith.constant 0 : index
    %c0_29 = arith.constant 0 : index
    %c0_30 = arith.constant 0 : index
    %65 = vector.load %arg4[%c0_28, %c0_29, %c0_30] : memref<3x128x128xbf16, #tpu.memory_space<vmem>>, vector<1x128x128xbf16>
    %66 = vector.shape_cast %65 : vector<1x128x128xbf16> to vector<128x128xbf16>
    %cst_31 = arith.constant dense<0.000000e+00> : vector<16x128xf32>
    %67 = tpu.matmul %63, %66, %cst_31 {dimension_numbers = #tpu.dot_dimension_numbers<[1], [0], [0], [1], [0, 0, 1, 1], [], []>} : vector<16x128xbf16>, vector<128x128xbf16>, vector<16x128xf32> -> vector<16x128xf32>
    %c1_32 = arith.constant 1 : index
    %c0_33 = arith.constant 0 : index
    %c0_34 = arith.constant 0 : index
    %68 = vector.load %arg4[%c1_32, %c0_33, %c0_34] : memref<3x128x128xbf16, #tpu.memory_space<vmem>>, vector<1x128x128xbf16>
    %69 = vector.shape_cast %68 : vector<1x128x128xbf16> to vector<128x128xbf16>
    %cst_35 = arith.constant dense<0.000000e+00> : vector<16x128xf32>
    %70 = tpu.matmul %63, %69, %cst_35 {dimension_numbers = #tpu.dot_dimension_numbers<[1], [0], [0], [1], [0, 0, 1, 1], [], []>} : vector<16x128xbf16>, vector<128x128xbf16>, vector<16x128xf32> -> vector<16x128xf32>
    %c2_36 = arith.constant 2 : index
    %c0_37 = arith.constant 0 : index
    %c0_38 = arith.constant 0 : index
    %71 = vector.load %arg4[%c2_36, %c0_37, %c0_38] : memref<3x128x128xbf16, #tpu.memory_space<vmem>>, vector<1x128x128xbf16>
    %72 = vector.shape_cast %71 : vector<1x128x128xbf16> to vector<128x128xbf16>
    %cst_39 = arith.constant dense<0.000000e+00> : vector<16x128xf32>
    %73 = tpu.matmul %63, %72, %cst_39 {dimension_numbers = #tpu.dot_dimension_numbers<[1], [0], [0], [1], [0, 0, 1, 1], [], []>} : vector<16x128xbf16>, vector<128x128xbf16>, vector<16x128xf32> -> vector<16x128xf32>
    %c1_i32_40 = arith.constant 1 : i32
    %74 = tpu.dynamic_rotate %67 by %c1_i32_40 dim 0 : vector<16x128xf32>, i32 -> vector<16x128xf32>
    %c15_i32_41 = arith.constant 15 : i32
    %75 = tpu.dynamic_rotate %73 by %c15_i32_41 dim 0 : vector<16x128xf32>, i32 -> vector<16x128xf32>
    %cst_42 = arith.constant 0.000000e+00 : f32
    %76 = vector.shape_cast %18 : vector<16x1xi1> to vector<16x1xi1>
    %77 = vector.broadcast %76 : vector<16x1xi1> to vector<16x128xi1>
    %78 = vector.broadcast %cst_42 : f32 to vector<16x128xf32>
    %79 = arith.select %77, %74, %78 : vector<16x128xi1>, vector<16x128xf32>
    %80 = arith.addf %70, %79 : vector<16x128xf32>
    %cst_43 = arith.constant 0.000000e+00 : f32
    %81 = vector.shape_cast %36 : vector<16x1xi1> to vector<16x1xi1>
    %82 = vector.broadcast %81 : vector<16x1xi1> to vector<16x128xi1>
    %83 = vector.broadcast %cst_43 : f32 to vector<16x128xf32>
    %84 = arith.select %82, %75, %83 : vector<16x128xi1>, vector<16x128xf32>
    %85 = arith.addf %80, %84 : vector<16x128xf32>
    %86 = vector.broadcast %64 : vector<1x128xf32> to vector<16x128xf32>
    %87 = arith.addf %85, %86 : vector<16x128xf32>
    %88 = math.tanh %87 : vector<16x128xf32>
    %c0_44 = arith.constant 0 : index
    %c0_45 = arith.constant 0 : index
    %89 = vector.load %arg6[%c0_44, %c0_45] : memref<16x128xf32, #tpu.memory_space<vmem>>, vector<16x128xf32>
    tpu.vector_store %arg6[%c0_44, %c0_45], %88 {strides = array<i32>} : memref<16x128xf32, #tpu.memory_space<vmem>>, vector<16x128xf32>,
    return
  }
  func.func @transform_0(%arg0: i32) -> (i32, i32) {
    %c0_i32 = arith.constant 0 : i32
    %c0_i32_0 = arith.constant 0 : i32
    return %arg0, %c0_i32 : i32, i32
  }
  func.func @transform_1(%arg0: i32) -> (i32, i32, i32) {
    %c0_i32 = arith.constant 0 : i32
    %c0_i32_0 = arith.constant 0 : i32
    %c0_i32_1 = arith.constant 0 : i32
    %c0_i32_2 = arith.constant 0 : i32
    return %c0_i32, %c0_i32_0, %c0_i32_1 : i32, i32, i32
  }
  func.func @transform_2(%arg0: i32) -> (i32, i32) {
    %c0_i32 = arith.constant 0 : i32
    %c0_i32_0 = arith.constant 0 : i32
    %c0_i32_1 = arith.constant 0 : i32
    return %c0_i32, %c0_i32_0 : i32, i32
  }
  func.func @transform_3(%arg0: i32) -> (i32, i32, i32) {
    %c0_i32 = arith.constant 0 : i32
    %c0_i32_0 = arith.constant 0 : i32
    %c0_i32_1 = arith.constant 0 : i32
    %c0_i32_2 = arith.constant 0 : i32
    return %c0_i32, %c0_i32_0, %c0_i32_1 : i32, i32, i32
  }
  func.func @transform_4(%arg0: i32) -> (i32, i32) {
    %c0_i32 = arith.constant 0 : i32
    %c0_i32_0 = arith.constant 0 : i32
    %c0_i32_1 = arith.constant 0 : i32
    return %c0_i32, %c0_i32_0 : i32, i32
  }
  func.func @transform_5(%arg0: i32) -> (i32, i32) {
    %c0_i32 = arith.constant 0 : i32
    %c0_i32_0 = arith.constant 0 : i32
    return %arg0, %c0_i32 : i32, i32
  }
}

</mosaic_0001>

<bundles_post_ra>
// kernel: double_conv_block.1
= control target key start
LH: loop header
LB: loop body
LE: loop exit
PB: predicated region body
PF: predicated region fallthrough
CT: control target
= control target key end

     0   :  { %s1063_s18 = smov 0   ;;  %s1222_s0 = inlined_call_operand.vmem [shape: bf16[32,64], index: 0, kind: input, shape index: {}]   ;;  %s1223_s1 = inlined_call_operand.vmem [shape: bf16[3,64,128], index: 1, kind: input, shape index: {}]   ;;  %s1224_s2 = inlined_call_operand.vmem [shape: f32[1,128], index: 2, kind: input, shape index: {}]   ;;  %s1225_s3 = inlined_call_operand.vmem [shape: bf16[3,128,128], index: 3, kind: input, shape index: {}]   ;;  %s1226_s4 = inlined_call_operand.vmem [shape: f32[1,128], index: 4, kind: input, shape index: {}]   ;;  %s1227_s5 = inlined_call_operand.vmem [shape: f32[32,128], index: 5, kind: output, shape index: {}]  }
   0x1 LB: > { %s760_s19 = sadd.s32 4294967295, %s1031_s18   ;;  %p764_p0 = scmp.ge.s32.totalorder %s1031_s18, 1  ;;  %s1031_s18 = sphi %s1063_s18, %s15_s18  }
   0x2   : > { %p188_p1 = scmp.lt.s32.totalorder %s1031_s18, 3 }
   0x4   : > { %p189_p2 = pnand %p764_p0, %p188_p1 }
   0x5   : > { %s765_s22 = sshll.u32 (!%p189_p2), %s760_s19, 1 }
   0x6   : > { %192 = sbr.rel (%p189_p2) target bundleno = 357 (0x165), region = 40  ;;  %p217_p3 = scmp.lt.s32.totalorder (!%p189_p2), %s765_s22, 3 }
   0xb   : > { %v974_v0 = vld [vmem:[%s1223_s1 + $0x18] sm:$0xff]  ;;  %v973_v2 = vld [vmem:[%s1223_s1 + $0x10] sm:$0xff]  ;;  %s1233_s22 = smov (!%p217_p3, %s765_s22), 3  ;;  %v972_v4 = vld [vmem:[%s1223_s1 + $0x8] sm:$0xff]  ;;  %vm300_vm0 = vcmask 523264   ;;  %v229_v38 = vlaneseq }
   0xc   : > { %v982_v1 = vld [vmem:[%s1223_s1 + $0x58] sm:$0xff]  ;;  %308 = vmatpush.bf16.msra.mxu2 %v974_v0  ;;  %v981_v3 = vld [vmem:[%s1223_s1 + $0x50] sm:$0xff]  ;;  %s766_s6 = sshll.u32 %s1233_s22, 2  ;;  %v980_v5 = vld [vmem:[%s1223_s1 + $0x48] sm:$0xff]  ;;  %s768_s7 = sshll.u32 %s1233_s22, 3 }
   0xd   : > { %364 = vmatpush.bf16.msra.mxu1 %v982_v1  ;;  %v971_v6 = vld [vmem:[%s1223_s1] sm:$0xff]  ;;  %s220_s13 = scalar_lea.vmem %s1222_s0, %s766_s6  ;;  %v978_v7 = vld [vmem:[%s1223_s1 + $0x38] sm:$0xff]  ;;  %v977_v10 = vld [vmem:[%s1223_s1 + $0x30] sm:$0xff]  ;;  %v230_v40 = vshrl.u32 %v229_v38, 7  ;;  %s226_s10 = scalar_lea.vmem %s1227_s5, %s768_s7 }
   0xe   : > { %v979_v8 = vld [vmem:[%s1223_s1 + $0x40] sm:$0xff]  ;;  %v976_v11 = vld [vmem:[%s1223_s1 + $0x28] sm:$0xff]  ;;  %v990_v13 = vld [vmem:[%s1225_s3 + $0x38] sm:$0xff] }
   0xf   : > { %v970_v9 = vld [vmem:[%s220_s13] sm:$0xff]  ;;  %v1006_v14 = vld [vmem:[%s1225_s3 + $0xb8] sm:$0xff]  ;;  %509 = vmatpush.bf16.msra.mxu3 %v990_v13  ;;  %v989_v16 = vld [vmem:[%s1225_s3 + $0x30] sm:$0xff]  ;;  %v236_v43 = vand.u32 15, %v230_v40  ;;  %vm376_vm1 = vcmp.lt.s32.totalorder %v230_v40, 1  ;;  %v231_v50 = vadd.s32 8, %v230_v40 }
  0x10   : > { %309 = vmatpush.bf16.msra.mxu2 %v973_v2  ;;  %v975_v12 = vld [vmem:[%s1223_s1 + $0x20] sm:$0xff]  ;;  %v998_v15 = vld [vmem:[%s1225_s3 + $0x78] sm:$0xff]  ;;  %605 = vmatpush.bf16.msra.mxu0 %v1006_v14  ;;  %v1005_v17 = vld [vmem:[%s1225_s3 + $0xb0] sm:$0xff]  ;;  %vm381_vm3 = vcmp.lt.s32.totalorder %v230_v40, 7 }
  0x11   : > { %365 = vmatpush.bf16.msra.mxu1 %v981_v3  ;;  %v997_v18 = vld [vmem:[%s1225_s3 + $0x70] sm:$0xff]  ;;  %v988_v19 = vld [vmem:[%s1225_s3 + $0x28] sm:$0xff]  ;;  %v987_v22 = vld [vmem:[%s1225_s3 + $0x20] sm:$0xff]  ;;  %vm1185_vm2 = vcmp.ne.s32.totalorder %v236_v43, 0  ;;  %v243_v55 = vand.u32 15, %v231_v50 }
  0x12   : > { %v1004_v20 = vld [vmem:[%s1225_s3 + $0xa8] sm:$0xff]  ;;  %v1003_v23 = vld [vmem:[%s1225_s3 + $0xa0] sm:$0xff]  ;;  %v986_v25 = vld [vmem:[%s1225_s3 + $0x18] sm:$0xff] }
  0x13   : > { %510 = vmatpush.bf16.msra.mxu3 %v989_v16  ;;  %v996_v21 = vld [vmem:[%s1225_s3 + $0x68] sm:$0xff]  ;;  %v995_v24 = vld [vmem:[%s1225_s3 + $0x60] sm:$0xff]  ;;  %v1002_v26 = vld [vmem:[%s1225_s3 + $0x98] sm:$0xff]  ;;  %vm1196_vm4 = vcmp.ne.s32.totalorder %v243_v55, 15 }
  0x14   : > { %310 = vmatpush.bf16.msra.mxu2 %v972_v4  ;;  %606 = vmatpush.bf16.msra.mxu0 %v1005_v17  ;;  %v994_v27 = vld [vmem:[%s1225_s3 + $0x58] sm:$0xff]  ;;  %v985_v28 = vld [vmem:[%s1225_s3 + $0x10] sm:$0xff]  ;;  %v984_v31 = vld [vmem:[%s1225_s3 + $0x8] sm:$0xff] }
  0x15   : > { %366 = vmatpush.bf16.msra.mxu1 %v980_v5  ;;  %v1001_v29 = vld [vmem:[%s1225_s3 + $0x90] sm:$0xff]  ;;  %v1000_v32 = vld [vmem:[%s1225_s3 + $0x88] sm:$0xff]  ;;  %v983_v35 = vld [vmem:[%s1225_s3] sm:$0xff] }
  0x16   : > { %v993_v30 = vld [vmem:[%s1225_s3 + $0x50] sm:$0xff]  ;;  %v992_v33 = vld [vmem:[%s1225_s3 + $0x48] sm:$0xff]  ;;  %v999_v36 = vld [vmem:[%s1225_s3 + $0x80] sm:$0xff] }
  0x17   : > { %511 = vmatpush.bf16.msra.mxu3 %v988_v19  ;;  %v991_v39 = vld [vmem:[%s1225_s3 + $0x40] sm:$0xff] }
  0x18   : > { %311 = vmatpush.bf16.msra.mxu2 %v971_v6  ;;  %607 = vmatpush.bf16.msra.mxu0 %v1004_v20  ;;  %v1015_v57 = vld [vmem:[%s1224_s2] ss:$0 sm:$0xff] }
  0x19   : > { %367 = vmatpush.bf16.msra.mxu1 %v979_v8 }
  0x1b   : > { %789 = vmatmul.msk.bf16.vlgmr.msra.gmra.mxu2 %vm300_vm0, %v970_v9  ;;  %512 = vmatpush.bf16.msra.mxu3 %v987_v22 }
  0x1c   : > { %418 = vmatpush.bf16.msrb.mxu2 %v978_v7  ;;  %822 = vmatmul.msk.bf16.vlgmr.msra.gmra.mxu1 %vm300_vm0, %v970_v9 }
  0x1d   : > { %677 = vmatpush.bf16.msrb.mxu1 %v998_v15  ;;  %608 = vmatpush.bf16.msra.mxu0 %v1003_v23 }
  0x1f   : > { %513 = vmatpush.bf16.msra.mxu3 %v986_v25 }
  0x20   : > { %419 = vmatpush.bf16.msrb.mxu2 %v977_v10 }
  0x21   : > { %678 = vmatpush.bf16.msrb.mxu1 %v997_v18  ;;  %609 = vmatpush.bf16.msra.mxu0 %v1002_v26 }
  0x23   : > { %514 = vmatpush.bf16.msra.mxu3 %v985_v28 }
  0x24   : > { %420 = vmatpush.bf16.msrb.mxu2 %v976_v11 }
  0x25   : > { %679 = vmatpush.bf16.msrb.mxu1 %v996_v21  ;;  %610 = vmatpush.bf16.msra.mxu0 %v1001_v29  ;;  %v1016_v21 = vld [vmem:[%s1226_s4] ss:$0 sm:$0xff] }
  0x27   : > { %515 = vmatpush.bf16.msra.mxu3 %v984_v31 }
  0x28   : > { %421 = vmatpush.bf16.msrb.mxu2 %v975_v12 }
  0x29   : > { %680 = vmatpush.bf16.msrb.mxu1 %v995_v24  ;;  %611 = vmatpush.bf16.msra.mxu0 %v1000_v32 }
  0x2b   : > { %839 = vmatmul.msk.bf16.vlgmr.msrb.gmra.mxu2 %vm300_vm0, %v970_v9  ;;  %516 = vmatpush.bf16.msra.mxu3 %v983_v35 }
  0x2d   : > { %681 = vmatpush.bf16.msrb.mxu1 %v994_v27  ;;  %612 = vmatpush.bf16.msra.mxu0 %v999_v36 }
  0x31   : > { %682 = vmatpush.bf16.msrb.mxu1 %v993_v30 }
  0x35   : > { %683 = vmatpush.bf16.msrb.mxu1 %v992_v33 }
  0x39   : > { %684 = vmatpush.bf16.msrb.mxu1 %v991_v39 }
  0x99   : > { %v369_v37 = vpop.f32.mrf.mxu1 }
  0x9a   : > { %v379_v48 = vrot.slane %v369_v37, 1 }
  0x9e   : > { %v313_v34 = vpop.f32.mrf.mxu2 }
  0x9f   : > { %v374_v44 = vrot.slane %v313_v34, 7 }
  0xa1   : > { %v371_v45 = vpop.f32.mrf.mxu1 }
  0xa2   : > { %v380_v49 = vrot.slane %v371_v45, 1 }
  0xa4   : > { %v382_v54 = vsel %vm381_vm3, %v379_v48, %v380_v49  ;;  %v383_v59 = vsel %vm381_vm3, %v380_v49, %v379_v48 }
  0xa5   : > { %v433_v0 = vsel %vm1196_vm4, %v383_v59, 0.0 }
  0xa6   : > { %v315_v41 = vpop.f32.mrf.mxu2 }
  0xa7   : > { %v375_v42 = vrot.slane %v315_v41, 7 }
  0xa9   : > { %v378_v47 = vsel %vm376_vm1, %v375_v42, %v374_v44  ;;  %v377_v60 = vsel %vm376_vm1, %v374_v44, %v375_v42 }
  0xaa   : > { %v388_v52 = vsel %vm1185_vm2, %v378_v47, 0.0 }
  0xae   : > { %v423_v51 = vpop.f32.mrf.mxu2 }
  0xaf   : > { %v424_v53 = vadd.f32 %v423_v51, %v388_v52 }
  0xb1   : > { %v434_v56 = vadd.f32 %v424_v53, %v382_v54 }
  0xb3   : > { %v439_v63 = vadd.f32 %v1015_v57, %v434_v56 }
  0xb5   : > { %1017 = vtanh.f32 %v439_v63 }
  0xb6   : > { %v425_v61 = vpop.f32.mrf.mxu2 }
  0xb7   : > { %v426_v62 = vadd.f32 %v425_v61, %v377_v60 }
  0xb9   : > { %v435_v1 = vadd.f32 %v433_v0, %v426_v62 }
  0xbb   : > { %v440_v2 = vadd.f32 %v1015_v57, %v435_v1  ;;  %v1018_v3 = vpop.eup %1017 }
  0xbd   : > { %1019 = vtanh.f32 %v440_v2 }
  0xc3   : > { %v1020_v4 = vpop.eup %1019 }
  0xc4   : > { %v443_v5 = vpack.c.bf16 %v1020_v4, %v1018_v3 }
  0xc6   : > { %517 = vmatmul.bf16.vlgmr.msra.gmra.mxu3 %v443_v5  ;;  %613 = vmatmul.bf16.vlgmr.msra.gmra.mxu0 %v443_v5 }
  0xc7   : > { %685 = vmatmul.bf16.vlgmr.msrb.gmra.mxu1 %v443_v5 }
 0x143   : > { %v614_v6 = vpop.f32.mrf.mxu0 }
 0x144   : > { %v686_v8 = vpop.f32.mrf.mxu1  ;;  %v623_v11 = vrot.slane %v614_v6, 1 }
 0x149   : > { %v518_v7 = vpop.f32.mrf.mxu3 }
 0x14a   : > { %v619_v13 = vrot.slane %v518_v7, 7 }
 0x14b   : > { %v616_v9 = vpop.f32.mrf.mxu0 }
 0x14c   : > { %v624_v10 = vrot.slane %v616_v9, 1  ;;  %v688_v16 = vpop.f32.mrf.mxu1 }
 0x14e   : > { %v626_v15 = vsel %vm381_vm3, %v624_v10, %v623_v11  ;;  %v625_v24 = vsel %vm381_vm3, %v623_v11, %v624_v10 }
 0x14f   : > { %v692_v22 = vsel %vm1196_vm4, %v626_v15, 0.0 }
 0x151   : > { %v520_v12 = vpop.f32.mrf.mxu3 }
 0x152   : > { %v620_v14 = vrot.slane %v520_v12, 7 }
 0x154   : > { %v621_v17 = vsel %vm376_vm1, %v619_v13, %v620_v14  ;;  %v622_v18 = vsel %vm376_vm1, %v620_v14, %v619_v13 }
 0x155   : > { %v627_v19 = vsel %vm1185_vm2, %v622_v18, 0.0  ;;  %v689_v20 = vadd.f32 %v688_v16, %v621_v17 }
 0x156   : > { %v687_v23 = vadd.f32 %v686_v8, %v627_v19 }
 0x157   : > { %v694_v25 = vadd.f32 %v692_v22, %v689_v20 }
 0x158   : > { %v693_v26 = vadd.f32 %v687_v23, %v625_v24 }
 0x159   : > { %v699_v27 = vadd.f32 %v1016_v21, %v694_v25 }
 0x15a   : > { %v698_v28 = vadd.f32 %v1016_v21, %v693_v26 }
 0x15c   : > { %1021 = vtanh.f32 %v698_v28 }
 0x15d   : > { %1023 = vtanh.f32 %v699_v27 }
 0x162   : > { %v1022_v29 = vpop.eup %1021 }
 0x163   : > { %v1024_v30 = vpop.eup %1023  ;;  %702 = vst [vmem:[%s226_s10] sm:$0xff] %v1022_v29 }
 0x164   : > { %703 = vst [vmem:[%s226_s10 + $0x8] sm:$0xff] %v1024_v30 }
 0x165 PF: > { %s15_s18 = sadd.s32 1, %s1031_s18  }
 0x166   : > { %p12_p4 = scmp.ge.s32.totalorder %s15_s18, 4  }
 0x168   :  { %14 = sbr.rel (!%p12_p4) target bundleno = 1 (0x1), region = 74 }

</bundles_post_ra>
